<compile_context>
chip_gen: v6e
topology: v6e:2x2x1
jax: 0.10.0
libtpu: 0.0.40
codegen_flags: <defaults>
</compile_context>

<pallas_src>
import functools
from typing import Iterable, List, Tuple

import jax
import jax.numpy as jnp
from jax.experimental import pallas as pl
from jax.experimental.pallas import tpu as pltpu


# ----------------------------------------------------------------------------
# Clock-cycle schedule (identical to the PyTorch reference; kept for fidelity.
# On one TensorCore it degenerates to a serial loop, which the fused kernels
# below compute in a single launch with identical results.)
# ----------------------------------------------------------------------------
def _clock_cycles(num_batches: int, num_partitions: int) -> Iterable[List[Tuple[int, int]]]:
    num_cycles = num_batches + num_partitions - 1
    for clock in range(num_cycles):
        schedule = []
        for partition in range(min(clock + 1, num_partitions)):
            microbatch = clock - partition
            if microbatch < num_batches:
                schedule.append((microbatch, partition))
        yield schedule


def _round_up(x: int, m: int) -> int:
    return (x + m - 1) // m * m


def _default_tile_m() -> int:
    # v6e/v7x MXU is 2x256^2 -> 256-row tiles; v5e (4x128^2) is already full at 128.
    try:
        kind = jax.devices()[0].device_kind.lower()
    except Exception:  # pragma: no cover
        kind = ""
    return 128 if "v5" in kind else 256


# ----------------------------------------------------------------------------
# Kernel A (resident weights): all partitions chained in-register for one row
# tile; the whole [L,H,H] bf16 weight stack stays VMEM-resident (constant
# block index -> DMA'd from HBM once).
# ----------------------------------------------------------------------------
def _fused_pipe_kernel(x_ref, w_ref, b_ref, o_ref, *, relu_flags):
    # x_ref: [tm, H]   w_ref: [L, H, H] bf16   b_ref: [L, 1, H] f32   o_ref: [tm, H]
    h = x_ref[...].astype(jnp.float32)
    for layer, relu in enumerate(relu_flags):
        # single downcast right before the MXU; accumulate f32
        h = jnp.dot(h.astype(w_ref.dtype), w_ref[layer],
                    preferred_element_type=jnp.float32)
        h = h + b_ref[layer]           # f32 VPU epilogue
        if relu:
            h = jnp.maximum(h, 0.0)
    o_ref[...] = h.astype(o_ref.dtype)


# ----------------------------------------------------------------------------
# Kernel B (layer streaming): grid = (row_tiles, L).  One layer's weights per
# grid step (double-buffered behind the previous layer's matmul); activation
# carried across the layer axis in a VMEM scratch.
# ----------------------------------------------------------------------------
def _streamed_pipe_kernel(x_ref, w_ref, b_ref, o_ref, h_ref, *, relu_flags):
    # x_ref: [tm, H]  w_ref: [1, H, H] bf16  b_ref: [1, 1, H]  o_ref: [tm, H]
    # h_ref: [tm, H] f32 scratch carry
    l = pl.program_id(1)
    n_layers = pl.num_programs(1)

    @pl.when(l == 0)
    def _():
        h_ref[...] = x_ref[...].astype(jnp.float32)

    h = jnp.dot(h_ref[...].astype(w_ref.dtype), w_ref[0],
                preferred_element_type=jnp.float32)
    h = h + b_ref[0]

    # ReLU on the layers flagged in relu_flags (static tuple, dynamic layer id).
    relu_idx = [i for i, r in enumerate(relu_flags) if r]
    if relu_idx:
        do_relu = functools.reduce(jnp.logical_or, [l == i for i in relu_idx])
        # scalar select -> lower bound 0 (relu) or -inf (identity); no mask broadcast
        lower = jnp.where(do_relu, jnp.float32(0.0), jnp.float32(-jnp.inf))
        h = jnp.maximum(h, lower)

    h_ref[...] = h

    @pl.when(l == n_layers - 1)
    def _():
        o_ref[...] = h.astype(o_ref.dtype)


# ----------------------------------------------------------------------------
# Wrapper: one pallas_call for the whole pipeline (all partitions, all rows).
# ----------------------------------------------------------------------------
def pipe_forward(x: jax.Array, w_stacked: jax.Array, b_stacked: jax.Array,
                 relu_flags, tile_m=None, force_stream: bool = False) -> jax.Array:
    B, H = x.shape
    L = w_stacked.shape[0]
    assert H % 128 == 0, "hidden dim must be a multiple of 128 (lane-dense output)"

    if tile_m is None:
        tile_m = _default_tile_m()

    # Row tile: multiple of 8 (sublane), at most tile_m; force >= 2 grid steps
    # so ("parallel",) can shard row tiles across both v7x TensorCores.
    tm = min(tile_m, _round_up(B, 8))
    if _round_up(B, tm) // tm < 2 and B > 8:
        tm = max(8, _round_up((B + 1) // 2, 8))
    Bp = _round_up(B, tm)
    # NOTE: zero-padded rows pass through bias+ReLU (become nonzero) and are
    # sliced off; harmless because nothing reduces across rows.
    xp = x if Bp == B else jnp.pad(x, ((0, Bp - B), (0, 0)))

    w_bytes = L * H * H * w_stacked.dtype.itemsize
    b_bytes = L * H * b_stacked.dtype.itemsize
    act_bytes = tm * H * 4
    vmem_cap = 64 << 20  # v7x per-TC physical; safe ceiling everywhere

    # resident path keeps the (pipeline double-buffered) weight stack in VMEM
    resident_budget = 2 * (w_bytes + b_bytes) + 6 * act_bytes + (2 << 20)
    use_stream = force_stream or (resident_budget > vmem_cap // 2)

    cost = pl.CostEstimate(
        flops=2 * L * Bp * H * H,
        transcendentals=0,
        bytes_accessed=w_bytes + b_bytes + 2 * Bp * H * x.dtype.itemsize)

    relu_flags = tuple(bool(r) for r in relu_flags)

    if not use_stream:
        vmem_limit = int(min(max(resident_budget, 32 << 20), vmem_cap))
        out = pl.pallas_call(
            functools.partial(_fused_pipe_kernel, relu_flags=relu_flags),
            out_shape=jax.ShapeDtypeStruct((Bp, H), x.dtype),
            grid=(Bp // tm,),
            in_specs=[
                pl.BlockSpec((tm, H), lambda i: (i, 0)),          # row tile
                pl.BlockSpec((L, H, H), lambda i: (0, 0, 0)),     # all weights, resident
                pl.BlockSpec((L, 1, H), lambda i: (0, 0, 0)),     # all biases, resident
            ],
            out_specs=pl.BlockSpec((tm, H), lambda i: (i, 0)),
            compiler_params=pltpu.CompilerParams(
                dimension_semantics=("parallel",),
                vmem_limit_bytes=vmem_limit),
            cost_estimate=cost,
        )(xp, w_stacked, b_stacked)
    else:
        stream_budget = 2 * ((w_bytes + b_bytes) // L) + 8 * act_bytes + (2 << 20)
        vmem_limit = int(min(max(stream_budget, 32 << 20), vmem_cap))
        out = pl.pallas_call(
            functools.partial(_streamed_pipe_kernel, relu_flags=relu_flags),
            out_shape=jax.ShapeDtypeStruct((Bp, H), x.dtype),
            grid=(Bp // tm, L),
            in_specs=[
                pl.BlockSpec((tm, H), lambda i, l: (i, 0)),
                pl.BlockSpec((1, H, H), lambda i, l: (l, 0, 0)),  # one layer per step
                pl.BlockSpec((1, 1, H), lambda i, l: (l, 0, 0)),
            ],
            out_specs=pl.BlockSpec((tm, H), lambda i, l: (i, 0)),
            scratch_shapes=[pltpu.VMEM((tm, H), jnp.float32)],
            compiler_params=pltpu.CompilerParams(
                dimension_semantics=("parallel", "arbitrary"),
                vmem_limit_bytes=vmem_limit),
            cost_estimate=cost,
        )(xp, w_stacked, b_stacked)

    return out[:B] if Bp != B else out


# ----------------------------------------------------------------------------
# Pipe: same interface as the reference module; forward is one fused kernel.
# ----------------------------------------------------------------------------
class Pipe:
    def __init__(self, partitions, split_size: int = 1):
        # partitions: list of (weight [H,H], bias [H], apply_relu) tuples
        self.partitions = partitions
        self.split_size = int(split_size)  # scheduling-only; numerics unchanged
        self.relu_flags = tuple(bool(r) for (_, _, r) in partitions)
        # bf16 weights (native MXU rate, half VMEM); f32 biases (f32 VPU epilogue)
        self.w_stacked = jnp.stack(
            [w for (w, _, _) in partitions]).astype(jnp.bfloat16)              # [L,H,H]
        self.b_stacked = jnp.stack(
            [b.reshape(1, -1) for (_, b, _) in partitions]).astype(jnp.float32)  # [L,1,H]
        self._fwd = jax.jit(
            pipe_forward, static_argnames=("relu_flags", "tile_m", "force_stream"))

    def forward(self, x: jax.Array, force_stream: bool = False) -> jax.Array:
        # The clock-cycle pipeline schedule on one TensorCore reduces to a serial
        # loop; the fused kernel computes the identical composition of all
        # partitions over every row in a single launch.
        return self._fwd(x, self.w_stacked, self.b_stacked,
                         relu_flags=self.relu_flags, force_stream=force_stream)


# ----------------------------------------------------------------------------
# Main
# ----------------------------------------------------------------------------
if __name__ == "__main__":
    key = jax.random.PRNGKey(0)

    batch = 32        # rows (padded/tiled to multiples of 8; split across 2 tiles)
    hidden = 128      # lane-dense feature dim (multiple of 128)
    split_size = 4    # micro-batches (scheduling only; numerics unchanged)
    num_parts = 3     # pipeline partitions

    # Deterministic parameter init (Linear layers: W [in,out], b [out]).
    partitions = []
    for p in range(num_parts):
        key, kw, kb = jax.random.split(key, 3)
        w = jax.random.normal(kw, (hidden, hidden), dtype=jnp.float32) * 0.1
        b = jax.random.normal(kb, (hidden,), dtype=jnp.float32) * 0.1
        apply_relu = p < num_parts - 1   # ReLU on all but the last stage
        partitions.append((w, b, apply_relu))

    key, kx = jax.random.split(key)
    x = jax.random.normal(kx, (batch, hidden), dtype=jnp.float32)

    pipe = Pipe(partitions, split_size=split_size)
    out_resident = jax.block_until_ready(pipe.forward(x))
    out_streamed = jax.block_until_ready(pipe.forward(x, force_stream=True))

    # Reference with the same bf16 weight/activation quantization (f32 accumulate),
    # matching the kernel's MXU numerics.
    wq = pipe.w_stacked.astype(jnp.float32)
    ref = x
    for l in range(num_parts):
        ref = jnp.dot(ref.astype(jnp.bfloat16).astype(jnp.float32), wq[l],
                      precision=jax.lax.Precision.HIGHEST) + pipe.b_stacked[l]
        if partitions[l][2]:
            ref = jnp.maximum(ref, 0.0)

    assert out_resident.shape == (batch, hidden)
    assert out_streamed.shape == (batch, hidden)
    err_r = float(jnp.max(jnp.abs(out_resident - ref)))
    err_s = float(jnp.max(jnp.abs(out_streamed - ref)))
    assert jnp.allclose(out_resident, ref, atol=2e-3, rtol=2e-3), err_r
    assert jnp.allclose(out_streamed, ref, atol=2e-3, rtol=2e-3), err_s

    print("KERNEL_OK")
</pallas_src>

<mosaic_0001>
module attributes {stable_mosaic.version = 11 : i64} {
  func.func @_fused_pipe_kernel(%arg0: i32, %arg1: memref<16x128xf32, #tpu.memory_space<vmem>>, %arg2: memref<3x128x128xbf16, #tpu.memory_space<vmem>>, %arg3: memref<3x1x128xf32, #tpu.memory_space<vmem>>, %arg4: memref<16x128xf32, #tpu.memory_space<vmem>>) attributes {dimension_semantics = [#tpu.dimension_semantics<parallel>], iteration_bounds = array<i64: 2>, scalar_prefetch = 0 : i64, scratch_operands = 0 : i64, tpu.core_type = #tpu.core_type<tc>, window_params = [{transform_indices = @transform_0, window_bounds = array<i64: 16, 128>}, {pipeline_mode = #tpu.pipeline_mode<synchronous>, transform_indices = @transform_1, window_bounds = array<i64: 3, 128, 128>}, {pipeline_mode = #tpu.pipeline_mode<synchronous>, transform_indices = @transform_2, window_bounds = array<i64: 3, 1, 128>}, {transform_indices = @transform_3, window_bounds = array<i64: 16, 128>}]} {
    %c0 = arith.constant 0 : index
    %c0_0 = arith.constant 0 : index
    %0 = vector.load %arg1[%c0, %c0_0] : memref<16x128xf32, #tpu.memory_space<vmem>>, vector<16x128xf32>
    %1 = arith.truncf %0 : vector<16x128xf32> to vector<16x128xbf16>
    %c0_1 = arith.constant 0 : index
    %c0_2 = arith.constant 0 : index
    %c0_3 = arith.constant 0 : index
    %2 = vector.load %arg2[%c0_1, %c0_2, %c0_3] : memref<3x128x128xbf16, #tpu.memory_space<vmem>>, vector<1x128x128xbf16>
    %3 = vector.shape_cast %2 : vector<1x128x128xbf16> to vector<128x128xbf16>
    %cst = arith.constant dense<0.000000e+00> : vector<16x128xf32>
    %4 = tpu.matmul %1, %3, %cst {dimension_numbers = #tpu.dot_dimension_numbers<[1], [0], [0], [1], [0, 0, 1, 1], [], []>} : vector<16x128xbf16>, vector<128x128xbf16>, vector<16x128xf32> -> vector<16x128xf32>
    %c0_4 = arith.constant 0 : index
    %c0_5 = arith.constant 0 : index
    %c0_6 = arith.constant 0 : index
    %5 = vector.load %arg3[%c0_4, %c0_5, %c0_6] : memref<3x1x128xf32, #tpu.memory_space<vmem>>, vector<1x1x128xf32>
    %6 = vector.shape_cast %5 : vector<1x1x128xf32> to vector<1x128xf32>
    %7 = vector.broadcast %6 : vector<1x128xf32> to vector<16x128xf32>
    %8 = arith.addf %4, %7 : vector<16x128xf32>
    %cst_7 = arith.constant 0.000000e+00 : f32
    %9 = vector.broadcast %cst_7 : f32 to vector<16x128xf32>
    %10 = arith.maximumf %8, %9 : vector<16x128xf32>
    %11 = arith.truncf %10 : vector<16x128xf32> to vector<16x128xbf16>
    %c1 = arith.constant 1 : index
    %c0_8 = arith.constant 0 : index
    %c0_9 = arith.constant 0 : index
    %12 = vector.load %arg2[%c1, %c0_8, %c0_9] : memref<3x128x128xbf16, #tpu.memory_space<vmem>>, vector<1x128x128xbf16>
    %13 = vector.shape_cast %12 : vector<1x128x128xbf16> to vector<128x128xbf16>
    %cst_10 = arith.constant dense<0.000000e+00> : vector<16x128xf32>
    %14 = tpu.matmul %11, %13, %cst_10 {dimension_numbers = #tpu.dot_dimension_numbers<[1], [0], [0], [1], [0, 0, 1, 1], [], []>} : vector<16x128xbf16>, vector<128x128xbf16>, vector<16x128xf32> -> vector<16x128xf32>
    %c1_11 = arith.constant 1 : index
    %c0_12 = arith.constant 0 : index
    %c0_13 = arith.constant 0 : index
    %15 = vector.load %arg3[%c1_11, %c0_12, %c0_13] : memref<3x1x128xf32, #tpu.memory_space<vmem>>, vector<1x1x128xf32>
    %16 = vector.shape_cast %15 : vector<1x1x128xf32> to vector<1x128xf32>
    %17 = vector.broadcast %16 : vector<1x128xf32> to vector<16x128xf32>
    %18 = arith.addf %14, %17 : vector<16x128xf32>
    %cst_14 = arith.constant 0.000000e+00 : f32
    %19 = vector.broadcast %cst_14 : f32 to vector<16x128xf32>
    %20 = arith.maximumf %18, %19 : vector<16x128xf32>
    %21 = arith.truncf %20 : vector<16x128xf32> to vector<16x128xbf16>
    %c2 = arith.constant 2 : index
    %c0_15 = arith.constant 0 : index
    %c0_16 = arith.constant 0 : index
    %22 = vector.load %arg2[%c2, %c0_15, %c0_16] : memref<3x128x128xbf16, #tpu.memory_space<vmem>>, vector<1x128x128xbf16>
    %23 = vector.shape_cast %22 : vector<1x128x128xbf16> to vector<128x128xbf16>
    %cst_17 = arith.constant dense<0.000000e+00> : vector<16x128xf32>
    %24 = tpu.matmul %21, %23, %cst_17 {dimension_numbers = #tpu.dot_dimension_numbers<[1], [0], [0], [1], [0, 0, 1, 1], [], []>} : vector<16x128xbf16>, vector<128x128xbf16>, vector<16x128xf32> -> vector<16x128xf32>
    %c2_18 = arith.constant 2 : index
    %c0_19 = arith.constant 0 : index
    %c0_20 = arith.constant 0 : index
    %25 = vector.load %arg3[%c2_18, %c0_19, %c0_20] : memref<3x1x128xf32, #tpu.memory_space<vmem>>, vector<1x1x128xf32>
    %26 = vector.shape_cast %25 : vector<1x1x128xf32> to vector<1x128xf32>
    %27 = vector.broadcast %26 : vector<1x128xf32> to vector<16x128xf32>
    %28 = arith.addf %24, %27 : vector<16x128xf32>
    %c0_21 = arith.constant 0 : index
    %c0_22 = arith.constant 0 : index
    %29 = vector.load %arg4[%c0_21, %c0_22] : memref<16x128xf32, #tpu.memory_space<vmem>>, vector<16x128xf32>
    tpu.vector_store %arg4[%c0_21, %c0_22], %28 {strides = array<i32>} : memref<16x128xf32, #tpu.memory_space<vmem>>, vector<16x128xf32>,
    return
  }
  func.func @transform_0(%arg0: i32) -> (i32, i32) {
    %c0_i32 = arith.constant 0 : i32
    %c0_i32_0 = arith.constant 0 : i32
    return %arg0, %c0_i32 : i32, i32
  }
  func.func @transform_1(%arg0: i32) -> (i32, i32, i32) {
    %c0_i32 = arith.constant 0 : i32
    %c0_i32_0 = arith.constant 0 : i32
    %c0_i32_1 = arith.constant 0 : i32
    %c0_i32_2 = arith.constant 0 : i32
    return %c0_i32, %c0_i32_0, %c0_i32_1 : i32, i32, i32
  }
  func.func @transform_2(%arg0: i32) -> (i32, i32, i32) {
    %c0_i32 = arith.constant 0 : i32
    %c0_i32_0 = arith.constant 0 : i32
    %c0_i32_1 = arith.constant 0 : i32
    %c0_i32_2 = arith.constant 0 : i32
    return %c0_i32, %c0_i32_0, %c0_i32_1 : i32, i32, i32
  }
  func.func @transform_3(%arg0: i32) -> (i32, i32) {
    %c0_i32 = arith.constant 0 : i32
    %c0_i32_0 = arith.constant 0 : i32
    return %arg0, %c0_i32 : i32, i32
  }
}

</mosaic_0001>

<bundles_post_ra>
// kernel: pipe_forward.1
= control target key start
LH: loop header
LB: loop body
LE: loop exit
PB: predicated region body
PF: predicated region fallthrough
CT: control target
= control target key end

     0   :  { %8 = vsyncpa [#allocation3], 0  ;;  %s1257_s0 = inlined_call_operand.hbm [shape: f32[32,128], index: 0, kind: input, shape index: {}]   ;;  %s1258_s1 = inlined_call_operand.hbm [shape: bf16[3,128,128], index: 1, kind: input, shape index: {}]   ;;  %s1259_s2 = inlined_call_operand.vmem [shape: f32[3,1,128], index: 2, kind: input, shape index: {}]   ;;  %s1260_s3 = inlined_call_operand.hbm [shape: f32[32,128], index: 3, kind: output, shape index: {}]  }
   0x1   :  { %10 = vsyncpa [#allocation3 + $0x1], 0 }
   0x2   :  { %11 = vsyncpa [#allocation6], 0 }
   0x3   :  { %12 = vsyncpa [#allocation4], 0 }
   0x4   :  { %14 = vsyncpa [#allocation4 + $0x1], 0  ;;  %s1033_s12 = smov 0   ;;  %s1035_s13 = smov 0  }
   0x5   :  { %s1037_s14 = smov 0   ;;  %s1039_s15 = smov 0  }
   0x6 LB: > { %s1054_s16 = sadd.s32 4294967295, %s1000_s15   ;;  %s655_s17 = sadd.s32 4294967294, %s1000_s15   ;;  %s1000_s15 = sphi %s1039_s15, %s1282_s15   ;;  %s996_s14 = sphi %s1037_s14, %s1281_s14   ;;  %s992_s13 = sphi %s1035_s13, %s1280_s13   ;;  %s988_s12 = sphi %s1033_s12, %s1279_s12  }
   0x7   : > { %p40_p0 = scmp.ne.s32.totalorder %s992_s13, %s988_s12  ;;  %p1261_p1 = scmp.eq.s32.totalorder %s1054_s16, 0 }
   0x8   : > { %p112_p3 = scmp.eq.s32.totalorder %s655_s17, 1  ;;  %p656_p5 = scmp.ge.s32.totalorder %s1000_s15, 1 }
   0x9   : > { %p1063_p4 = por %p1261_p1, %p40_p0  ;;  %p119_p7 = scmp.lt.s32.totalorder %s1000_s15, 3 }
   0xa   : > { %p1068_p6 = por %p112_p3, %p40_p0  ;;  %s1002_s21 = smov [#allocation5]  }
   0xb   : > { %s1265_s18 = scalar_select %p1063_p4, 1, 0 }
   0xc   : > { %s1266_s19 = scalar_select %p1068_p6, 1, 0 }
   0xd   : > { %p1073_p8 = pnand %p656_p5, %p119_p7  ;;  %s131_s22 = sshll.u32 %s1002_s21, 4  ;;  %s132_s22 = int_to_ptr.vmem [resolvable:$true] %s131_s22 }
   0xe   : > { %s1087_s24 = sadd.s32 1, %s1000_s15   ;;  %s27_s25 = sadd.s32 1, %s996_s14 }
   0xf   : > { %s1267_s20 = scalar_select %p1073_p8, 1, 0 }
  0x10   : > { %p797_p9 = pneg %p1073_p8  ;;  %s24_s26 = ssub.s32 %s1000_s15, %s1087_s24 }
  0x11   : > { %s889_s27 = scalar_lea.vmem %s132_s22, 3072  ;;  %p897_p5 = scmp.lt.s32.totalorder %s132_s22, %s132_s22 }
  0x12   : > { %p1082_p11 = pnand %p797_p9, %p1261_p1  ;;  %p890_p13 = scmp.ne.s32.totalorder %s132_s22, %s889_s27 }
  0x13   : > { %p898_p7 = scmp.lt.s32.totalorder %s889_s27, %s889_s27 }
  0x14   : > { %p880_p12 = pneg %p1082_p11 }
  0x15   : > { %p899_p10 = por %p898_p7, %p897_p5 }
  0x16   : > { %p892_p0 = pnand %p890_p13, %p880_p12 }
  0x18   : > { %p893_p3 = pneg %p892_p0 }
  0x1a   : > { %p900_p2 = pnand %p899_p10, %p893_p3 }
  0x1c   : > { %903 = shalt.err (!%p900_p2)
}
  0x1d   : > { %s1003_s28 = smov 64   ;;  %s1004_s29 = smov 4  }
  0x1e   : > { %800 = dma.hbm_to_vmem [thread:$0]  (!%p1082_p11), %s1258_s1, 3072, %s132_s22, [#allocation6], %s1003_s28, %s1003_s28, %s1004_s29  }
  0x1f   : > { %p25_p9 = scmp.eq.s32.totalorder %s24_s26, 0  ;;  %p34_p12 = scmp.ne.s32.totalorder %s996_s14, %s992_s13 }
  0x20   : > { %p35_p10 = scmp.eq.s32.totalorder %s1000_s15, 0  ;;  %p810_p2 = scmp.lt.s32.totalorder %s1000_s15, 2 }
  0x21   : > { %s1104_s5 = scalar_select %p25_p9, %s996_s14, %s27_s25  }
  0x22   : > { %p36_p13 = por %p35_p10, %p34_p12  ;;  %p1269_p0 = scmp.eq.s32.totalorder %s1054_s16, 1 }
  0x23   : > { %s148_s7 = sand.u32 1, %s996_s14   ;;  %s700_s8 = sshll.u32 %s1000_s15, 8 }
  0x24   : > { %p1108_p3 = por %p1269_p0, %p34_p12  ;;  %s659_s9 = sshll.u32 %s148_s7, 4 }
  0x25   : > { %s1117_s17 = scalar_lea.hbm %s1257_s0, %s700_s8  ;;  %s152_s21 = scalar_lea.vmem [#allocation2], %s659_s9 }
  0x26   : > { %s1270_s6 = scalar_select %p1108_p3, 1, 0 }
  0x27   : > { %s159_s22 = sshll.u32 %s152_s21, 4  ;;  %p1119_p11 = pnand %p810_p2, %p36_p13  ;;  %s1123_s22 = int_to_ptr.vmem [resolvable:$true] %s159_s22 }
  0x28   : > { %s1125_s25 = scalar_lea.sflag [#allocation3], %s148_s7  ;;  %s904_s26 = scalar_lea.hbm %s1117_s17, 256 }
  0x29   : > { %p905_p5 = scmp.ne.s32.totalorder %s1117_s17, %s904_s26  ;;  %p906_p7 = pneg %p1119_p11 }
  0x2a   : > { %s909_s29 = scalar_lea.hbm %s1257_s0, 512  ;;  %p910_p10 = scmp.lt.s32.totalorder %s1117_s17, %s1257_s0 }
  0x2b   : > { %p907_p9 = pnand %p906_p7, %p905_p5  ;;  %p911_p2 = scmp.lt.s32.totalorder %s909_s29, %s904_s26 }
  0x2d   : > { %p908_p12 = pneg %p907_p9  ;;  %p912_p13 = por %p911_p2, %p910_p10 }
  0x2f   : > { %p913_p0 = pnand %p912_p13, %p908_p12 }
  0x31   : > { %916 = shalt.err (!%p913_p0)
}
  0x32   : > { %s917_s7 = scalar_lea.vmem %s1123_s22, 256  ;;  %s1005_s8 = smov [#allocation2]  }
  0x33   : > { %p918_p1 = scmp.ne.s32.totalorder %s1123_s22, %s917_s7  ;;  %s922_s9 = sshll.u32 %s1005_s8, 4  ;;  %s923_s9 = int_to_ptr.vmem [resolvable:$false] %s922_s9 }
  0x34   : > { %s924_s10 = scalar_lea.vmem %s923_s9, 512  ;;  %p925_p9 = scmp.lt.s32.totalorder %s1123_s22, %s923_s9 }
  0x35   : > { %p920_p6 = pnand %p918_p1, %p906_p7  ;;  %p926_p3 = scmp.lt.s32.totalorder %s924_s10, %s917_s7 }
  0x37   : > { %p921_p5 = pneg %p920_p6  ;;  %p927_p4 = por %p926_p3, %p925_p9 }
  0x39   : > { %p928_p8 = pnand %p927_p4, %p921_p5 }
  0x3b   : > { %931 = shalt.err (!%p928_p8)
}
  0x3c   : > { %s1006_s11 = smov 128   ;;  %s1007_s21 = smov 8  }
  0x3d   : > { %804 = dma.hbm_to_vmem [thread:$0]  (!%p1119_p11), %s1117_s17, 256, %s1123_s22, %s1125_s25, %s1006_s11, %s1006_s11, %s1007_s21  }
  0x3e   : > { %p1272_p1 = scmp.ne.s32.totalorder %s1267_s20, 0 }
  0x3f   : > { %s1149_s26 = sand.u32 (!%p1272_p1), 1, %s992_s13   ;;  %p1273_p4 = scmp.ne.s32.totalorder (!%p1272_p1), %s1265_s18, 0 }
  0x40   : > { %171 = sbr.rel (%p1272_p1) target bundleno = 726 (0x2d6), region = 32  ;;  %s663_s27 = sshll.u32 (!%p1272_p1), %s1149_s26, 4 }
  0x41   : > { %s174_s28 = scalar_lea.sflag (!%p1272_p1), [#allocation3], %s1149_s26  ;;  %s1155_s29 = scalar_lea.vmem (!%p1272_p1), [#allocation2], %s663_s27 }
  0x45   : > { %975 = dma.done.wait (%p1273_p4), %s174_s28, 256  }
  0x46   : > { %977 = vsyncadd (%p1273_p4), %s174_s28, 4294967040  ;;  %p1274_p6 = scmp.eq.s32.totalorder %s1054_s16, 0 }
  0x48   : > { %979 = dma.done.wait (%p1274_p6), [#allocation6], 3072   ;;  %p1275_p8 = pmov %p1274_p6 }
  0x49   : > { %v1008_v0 = vmov 0.0   ;;  %vm1009_vm0 = vmmov 0   ;;  %v854_v1 = vld [vmem:[#allocation5 + $0x38] sm:$0xff]   ;;  %v855_v2 = vld [vmem:[#allocation5 + $0x30] sm:$0xff]   ;;  %v856_v3 = vld [vmem:[#allocation5 + $0x28] sm:$0xff]   ;;  %s203_s30 = scalar_lea.vmem [#allocation7], %s663_s27 }
  0x4a   : > { %981 = vsyncadd (%p1275_p8), [#allocation6], 4294964224  ;;  %729 = vmatprep.subr.bf16.mxu0 %v1008_v0  ;;  %745 = vmatprep.mubr.msk.bf16.mxu0 %vm1009_vm0, %v1008_v0  ;;  %v862_v4 = vld [vmem:[#allocation5 + $0x78] sm:$0xff]   ;;  %v857_v5 = vld [vmem:[#allocation5 + $0x20] sm:$0xff]   ;;  %s572_s4 = sshll.u32 %s203_s30, 4  ;;  %s701_s7 = sshll.u32 %s1054_s16, 8  ;;  %s1209_s4 = int_to_ptr.vmem [resolvable:$true] %s572_s4 }
  0x4b   : > { %749 = vmatprep.subr.bf16.mxu1 %v1008_v0  ;;  %765 = vmatprep.mubr.msk.bf16.mxu1 %vm1009_vm0, %v1008_v0  ;;  %v863_v6 = vld [vmem:[#allocation5 + $0x70] sm:$0xff]   ;;  %v858_v7 = vld [vmem:[#allocation5 + $0x18] sm:$0xff]   ;;  %v864_v8 = vld [vmem:[#allocation5 + $0x68] sm:$0xff]   ;;  %s1214_s10 = scalar_lea.hbm %s1260_s3, %s701_s7  ;;  %s559_s11 = scalar_lea.sflag [#allocation4], %s1149_s26 }
  0x4c   : > { %730 = vmatpush3.bf16.msra.mxu0 %v854_v1  ;;  %750 = vmatpush3.bf16.msra.mxu1 %v862_v4  ;;  %v859_v9 = vld [vmem:[#allocation5 + $0x10] sm:$0xff]   ;;  %v865_v10 = vld [vmem:[#allocation5 + $0x60] sm:$0xff]   ;;  %v860_v11 = vld [vmem:[#allocation5 + $0x8] sm:$0xff]   ;;  %s932_s21 = scalar_lea.vmem %s1209_s4, 256  ;;  %p1276_p11 = scmp.ne.s32.totalorder %s1270_s6, 0 }
  0x4d   : > { %731 = vmatprep.subr.bf16.mxu0 %v1008_v0  ;;  %751 = vmatprep.subr.bf16.mxu1 %v1008_v0  ;;  %v866_v12 = vld [vmem:[#allocation5 + $0x58] sm:$0xff]   ;;  %v861_v13 = vld [vmem:[#allocation5] sm:$0xff]   ;;  %v867_v17 = vld [vmem:[#allocation5 + $0x50] sm:$0xff]   ;;  %p933_p3 = scmp.ne.s32.totalorder %s1209_s4, %s932_s21  ;;  %s1010_s16 = smov [#allocation7]  }
  0x4e   : > { %v207_v14 = vld [vmem:[%s1155_s29] sm:$0xff]  ;;  %v208_v15 = vld [vmem:[%s1155_s29 + $0x8] sm:$0xff]  ;;  %s936_s27 = sshll.u32 %s1010_s16, 4  ;;  %s937_s27 = int_to_ptr.vmem [resolvable:$false] %s936_s27 }
  0x4f   : > { %v209_v16 = vpack.c.bf16 %v208_v15, %v207_v14  ;;  %v868_v18 = vld [vmem:[#allocation5 + $0x48] sm:$0xff]   ;;  %v869_v19 = vld [vmem:[#allocation5 + $0x40] sm:$0xff]   ;;  %v870_v20 = vld [vmem:[#allocation5 + $0xb8] sm:$0xff]   ;;  %p934_p7 = pnand %p933_p3, %p1276_p11  ;;  %s938_s28 = scalar_lea.vmem %s937_s27, 512 }
  0x50   : > { %732 = vmatpush3.bf16.msra.mxu0 %v855_v2  ;;  %752 = vmatpush3.bf16.msra.mxu1 %v863_v6  ;;  %v871_v21 = vld [vmem:[#allocation5 + $0xb0] sm:$0xff]   ;;  %v872_v22 = vld [vmem:[#allocation5 + $0xa8] sm:$0xff]   ;;  %v873_v23 = vld [vmem:[#allocation5 + $0xa0] sm:$0xff]   ;;  %p939_p10 = scmp.lt.s32.totalorder %s1209_s4, %s937_s27  ;;  %p940_p2 = scmp.lt.s32.totalorder %s938_s28, %s932_s21 }
  0x51   : > { %733 = vmatprep.subr.bf16.mxu0 %v1008_v0  ;;  %753 = vmatprep.subr.bf16.mxu1 %v1008_v0  ;;  %v874_v24 = vld [vmem:[#allocation5 + $0x98] sm:$0xff]   ;;  %v666_v25 = vld [vmem:[%s1259_s2] ss:$0 sm:$0xff]  ;;  %v875_v35 = vld [vmem:[#allocation5 + $0x90] sm:$0xff]   ;;  %p935_p12 = pneg %p934_p7 }
  0x52   : > { %v876_v36 = vld [vmem:[#allocation5 + $0x88] sm:$0xff]   ;;  %v877_v37 = vld [vmem:[#allocation5 + $0x80] sm:$0xff]   ;;  %p941_p13 = por %p940_p2, %p939_p10 }
  0x53   : > { %v676_v38 = vld [vmem:[%s1259_s2 + $0x1] ss:$0 sm:$0xff]  ;;  %v686_v48 = vld [vmem:[%s1259_s2 + $0x2] ss:$0 sm:$0xff] }
  0x54   : > { %734 = vmatpush3.bf16.msra.mxu0 %v856_v3  ;;  %754 = vmatpush3.bf16.msra.mxu1 %v864_v8  ;;  %p942_p0 = pnand %p941_p13, %p935_p12 }
  0x55   : > { %735 = vmatprep.subr.bf16.mxu0 %v1008_v0  ;;  %755 = vmatprep.subr.bf16.mxu1 %v1008_v0 }
  0x58   : > { %736 = vmatpush3.bf16.msra.mxu0 %v857_v5  ;;  %756 = vmatpush3.bf16.msra.mxu1 %v865_v10 }
  0x59   : > { %737 = vmatprep.subr.bf16.mxu0 %v1008_v0  ;;  %757 = vmatprep.subr.bf16.mxu1 %v1008_v0 }
  0x5c   : > { %738 = vmatpush3.bf16.msra.mxu0 %v858_v7  ;;  %758 = vmatpush3.bf16.msra.mxu1 %v866_v12 }
  0x5d   : > { %739 = vmatprep.subr.bf16.mxu0 %v1008_v0  ;;  %759 = vmatprep.subr.bf16.mxu1 %v1008_v0 }
  0x60   : > { %740 = vmatpush3.bf16.msra.mxu0 %v859_v9  ;;  %760 = vmatpush3.bf16.msra.mxu1 %v867_v17 }
  0x61   : > { %741 = vmatprep.subr.bf16.mxu0 %v1008_v0  ;;  %761 = vmatprep.subr.bf16.mxu1 %v1008_v0 }
  0x64   : > { %742 = vmatpush3.bf16.msra.mxu0 %v860_v11  ;;  %762 = vmatpush3.bf16.msra.mxu1 %v868_v18 }
  0x65   : > { %743 = vmatprep.subr.bf16.mxu0 %v1008_v0  ;;  %763 = vmatprep.subr.bf16.mxu1 %v1008_v0 }
  0x68   : > { %744 = vmatpush3.bf16.msra.mxu0 %v861_v13  ;;  %764 = vmatpush3.bf16.msra.mxu1 %v869_v19 }
  0x69   : > { %769 = vmatprep.subr.bf16.mxu0 %v1008_v0 }
  0x6b   : > { %746 = vmatmul.mubr.bf16.vlgmr.msra.gmra.mxu0 %v209_v16 }
  0x6c   : > { %785 = vmatprep.mubr.msk.bf16.mxu0 %vm1009_vm0, %v1008_v0  ;;  %770 = vmatpush3.bf16.msra.mxu0 %v870_v20 }
  0x6d   : > { %771 = vmatprep.subr.bf16.mxu0 %v1008_v0 }
  0x70   : > { %772 = vmatpush3.bf16.msra.mxu0 %v871_v21 }
  0x71   : > { %773 = vmatprep.subr.bf16.mxu0 %v1008_v0 }
  0x74   : > { %774 = vmatpush3.bf16.msra.mxu0 %v872_v22 }
  0x75   : > { %775 = vmatprep.subr.bf16.mxu0 %v1008_v0 }
  0x78   : > { %776 = vmatpush3.bf16.msra.mxu0 %v873_v23 }
  0x79   : > { %777 = vmatprep.subr.bf16.mxu0 %v1008_v0 }
  0x7c   : > { %778 = vmatpush3.bf16.msra.mxu0 %v874_v24 }
  0x7d   : > { %779 = vmatprep.subr.bf16.mxu0 %v1008_v0 }
  0x80   : > { %780 = vmatpush3.bf16.msra.mxu0 %v875_v35 }
  0x81   : > { %781 = vmatprep.subr.bf16.mxu0 %v1008_v0 }
  0x84   : > { %782 = vmatpush3.bf16.msra.mxu0 %v876_v36 }
  0x85   : > { %783 = vmatprep.subr.bf16.mxu0 %v1008_v0 }
  0x88   : > { %784 = vmatpush3.bf16.msra.mxu0 %v877_v37 }
 0x12b   : > { %v315_v26 = vpop.f32.mrf.mxu0 }
 0x12c   : > { %v316_v28 = vadd.f32 %v666_v25, %v315_v26 }
 0x12d   : > { %v747_v27 = vpop.f32.mrf.mxu0 }
 0x12e   : > { %v322_v32 = vmax.f32 %v316_v28, 0.0 }
 0x12f   : > { %v318_v29 = vpop.f32.mrf.mxu0 }
 0x130   : > { %v319_v30 = vadd.f32 %v666_v25, %v318_v29 }
 0x131   : > { %v748_v31 = vpop.f32.mrf.mxu0 }
 0x132   : > { %v323_v33 = vmax.f32 %v319_v30, 0.0 }
 0x134   : > { %v324_v34 = vpack.c.bf16 %v323_v33, %v322_v32 }
 0x136   : > { %766 = vmatmul.mubr.bf16.vlgmr.msra.gmra.mxu1 %v324_v34 }
 0x1f6   : > { %v432_v39 = vpop.f32.mrf.mxu1 }
 0x1f7   : > { %v433_v41 = vadd.f32 %v676_v38, %v432_v39 }
 0x1f8   : > { %v767_v40 = vpop.f32.mrf.mxu1 }
 0x1f9   : > { %v439_v45 = vmax.f32 %v433_v41, 0.0 }
 0x1fa   : > { %v435_v42 = vpop.f32.mrf.mxu1 }
 0x1fb   : > { %v436_v43 = vadd.f32 %v676_v38, %v435_v42 }
 0x1fc   : > { %v768_v44 = vpop.f32.mrf.mxu1 }
 0x1fd   : > { %v440_v46 = vmax.f32 %v436_v43, 0.0 }
 0x1ff   : > { %v441_v47 = vpack.c.bf16 %v440_v46, %v439_v45 }
 0x201   : > { %786 = vmatmul.mubr.bf16.vlgmr.msra.gmra.mxu0 %v441_v47 }
 0x2c1   : > { %v549_v49 = vpop.f32.mrf.mxu0 }
 0x2c2   : > { %v550_v50 = vadd.f32 %v686_v48, %v549_v49 }
 0x2c3   : > { %v787_v51 = vpop.f32.mrf.mxu0 }
 0x2c4   : > { %556 = vst [vmem:[%s203_s30] sm:$0xff] %v550_v50 }
 0x2c5   : > { %v552_v52 = vpop.f32.mrf.mxu0 }
 0x2c6   : > { %v553_v53 = vadd.f32 %v686_v48, %v552_v52 }
 0x2c7   : > { %v788_v54 = vpop.f32.mrf.mxu0 }
 0x2c8   : > { %557 = vst [vmem:[%s203_s30 + $0x8] sm:$0xff] %v553_v53 }
 0x2c9   : > { %945 = shalt.err (!%p942_p0)
}
 0x2ca   : > { %s946_s29 = scalar_lea.hbm %s1214_s10, 256  ;;  %s950_s17 = scalar_lea.hbm %s1260_s3, 512 }
 0x2cb   : > { %p947_p5 = scmp.ne.s32.totalorder %s1214_s10, %s946_s29  ;;  %p951_p4 = scmp.lt.s32.totalorder %s1214_s10, %s1260_s3 }
 0x2cc   : > { %p952_p6 = scmp.lt.s32.totalorder %s950_s17, %s946_s29 }
 0x2cd   : > { %p948_p9 = pnand %p947_p5, %p1276_p11 }
 0x2ce   : > { %p953_p8 = por %p952_p6, %p951_p4 }
 0x2cf   : > { %p949_p1 = pneg %p948_p9 }
 0x2d1   : > { %p954_p3 = pnand %p953_p8, %p949_p1 }
 0x2d3   : > { %957 = shalt.err (!%p954_p3)
}
 0x2d4   : > { %s1011_s25 = smov 128   ;;  %s1012_s30 = smov 8  }
 0x2d5   : > { %795 = dma.vmem_to_hbm [thread:$0]  (%p1276_p11), %s1209_s4, 256, %s1214_s10, %s559_s11, %s1011_s25, %s1011_s25, %s1012_s30  }
 0x2d6 PF: > { %s587_s7 = sand.u32 1, %s988_s12   ;;  %p1277_p7 = scmp.ne.s32.totalorder %s1266_s19, 0 }
 0x2d7   : > { %p1278_p12 = scmp.ge.s32.totalorder %s1000_s15, 2  ;;  %s588_s8 = scalar_lea.sflag [#allocation4], %s587_s7 }
 0x2d9   : > { %p806_p10 = pnand %p1278_p12, %p1277_p7 }
 0x2db   : > { %p807_p2 = pneg %p806_p10 }
 0x2dd   : > { %983 = dma.done.wait (%p807_p2), %s588_s8, 256  }
 0x2de   : > { %985 = vsyncadd (%p807_p2), %s588_s8, 4294967040  ;;  %p17_p13 = scmp.ge.s32.totalorder %s1087_s24, 4   ;;  %s1279_s12 = smov %s992_s13 }
 0x2df   : > { %s1280_s13 = smov %s996_s14  ;;  %s1281_s14 = smov %s1104_s5 }
 0x2e0   : > { %s1282_s15 = smov %s1087_s24  ;;  %19 = sbr.rel (!%p17_p13) target bundleno = 6 (0x6), region = 85 }
 0x2e5   :  { %593 = vsyncpa [#allocation3], 1 }
 0x2e6   :  { %595 = vsyncpa [#allocation3 + $0x1], 1 }
 0x2e7   :  { %596 = vsyncpa [#allocation6], 1 }
 0x2e8   :  { %597 = vsyncpa [#allocation4], 1 }
 0x2e9   :  { %599 = vsyncpa [#allocation4 + $0x1], 1 }

</bundles_post_ra>
